<compile_context>
chip_gen: v7x
topology: tpu7x:2x2x1
jax: 0.10.0
libtpu: 0.0.40
codegen_flags: <defaults>
</compile_context>

<pallas_src>
import math

import jax
import jax.numpy as jnp
from jax import lax
from jax.experimental import pallas as pl
from jax.experimental.pallas import tpu as pltpu

DPAD = 128  # lane-dense padded feature width


# ----------------------------------------------------------------------------
# Pallas kernel: full forward pass (everything VMEM-resident, no grid)
# ----------------------------------------------------------------------------
def diffusion_fwd_kernel(x_ref, a_ref, w_ref, v_ref, t_ref, o_ref):
    """
    x_ref : [N, DPAD]        f32   node features, zero-padded to 128 lanes
    a_ref : [N, N]           f32   D^-1/2 (A+I) D^-1/2
    w_ref : [6, DPAD, DPAD]  bf16  GCN weights (enc0..2, dec0..2), zero-padded
    v_ref : [9, DPAD]        f32   rows: g0,g1,g2, be0,be1,be2, db0,db1,db2
    t_ref : [1, DPAD]        f32   time projection row (zero padded)
    o_ref : [N, DPAD]        f32
    """
    x = x_ref[...]
    a_hat = a_ref[...]
    v = v_ref[...]          # single load; sliced as an array (2 f32 vregs)
    t_row = t_ref[...]

    n = x.shape[0]
    inv_n = jnp.float32(1.0 / n)
    eps = jnp.float32(1e-5)

    def gcn(h, w_bf16):
        # GCNConv: A_hat @ (h @ W); bias handled by the caller where it matters.
        hw = jnp.dot(h.astype(jnp.bfloat16), w_bf16,
                     preferred_element_type=jnp.float32)
        return jnp.dot(a_hat, hw, preferred_element_type=jnp.float32)

    def bn_time(h, gamma, shift_row):
        # Training-mode BatchNorm folded with the "+ time embedding" add:
        #   gamma * (h - mu) * rsqrt(var + eps) + (beta + t_proj)
        mu = jnp.sum(h, axis=0, keepdims=True) * inv_n
        d = h - mu
        var = jnp.sum(d * d, axis=0, keepdims=True) * inv_n
        scale = gamma * lax.rsqrt(var + eps)
        return d * scale + shift_row

    def silu(u):
        return u * jax.nn.sigmoid(u)

    # ---- encoder: 3x (GCN -> BN -> +time -> SiLU -> dropout[eval]) --------
    # Encoder GCN biases omitted: a per-feature constant is annihilated by the
    # BatchNorm mean subtraction that immediately follows.
    h = x
    for i in range(3):
        shift = v[3 + i:4 + i, :] + t_row          # beta_i + t_proj  ([1,DPAD])
        h = silu(bn_time(gcn(h, w_ref[i]), v[i:i + 1, :], shift))
    # TODO(synk): Dropout(0.2) in training mode is stochastic; modeled as identity (eval).

    # ---- decoder: GCN -> SiLU -> GCN -> SiLU -> GCN ------------------------
    h = silu(gcn(h, w_ref[3]) + v[6:7, :])
    h = silu(gcn(h, w_ref[4]) + v[7:8, :])
    h = gcn(h, w_ref[5]) + v[8:9, :]

    o_ref[...] = h


# ----------------------------------------------------------------------------
# Plain-JAX glue
# ----------------------------------------------------------------------------
def sinusoidal_embedding(t, dim):
    """Matches SinusoidalPositionEmbeddings.forward for a [1] int timestep."""
    half = dim // 2
    freq = math.log(10000.0) / (half - 1)
    emb = jnp.exp(jnp.arange(half, dtype=jnp.float32) * -freq)
    t = t.astype(jnp.float32)
    e = t[:, None] * emb[None, :]
    return jnp.concatenate([jnp.sin(e), jnp.cos(e)], axis=-1)  # [1, dim]


def build_normalized_adjacency(edge_index, num_nodes):
    """Dense D^-1/2 (A + I) D^-1/2 as used by GCNConv."""
    a = jnp.zeros((num_nodes, num_nodes), jnp.float32)
    a = a.at[edge_index[0], edge_index[1]].set(1.0)
    a = a + jnp.eye(num_nodes, dtype=jnp.float32)        # self loops
    deg = jnp.sum(a, axis=1)
    d_inv_sqrt = 1.0 / jnp.sqrt(deg)
    return a * d_inv_sqrt[:, None] * d_inv_sqrt[None, :]


def init_params(key, node_dim, hidden_dim):
    ks = jax.random.split(key, 32)
    k = iter(range(32))

    def lin_w(kk, fan_in, fan_out):
        s = 1.0 / math.sqrt(fan_in)
        return jax.random.uniform(kk, (fan_in, fan_out), jnp.float32, -s, s)

    def lin_b(kk, fan_in, fan_out):
        s = 1.0 / math.sqrt(fan_in)
        return jax.random.uniform(kk, (1, fan_out), jnp.float32, -s, s)

    p = {}
    # time MLP
    p["tw1"] = lin_w(ks[next(k)], hidden_dim, hidden_dim * 2)
    p["tb1"] = lin_b(ks[next(k)], hidden_dim, hidden_dim * 2)
    p["tw2"] = lin_w(ks[next(k)], hidden_dim * 2, node_dim)
    p["tb2"] = lin_b(ks[next(k)], hidden_dim * 2, node_dim)
    # TODO(synk): PyTorch builds a FRESH random nn.Linear(node_dim, hidden) per forward
    # call for the time projection; fixed deterministic weights used instead.
    p["pw"] = lin_w(ks[next(k)], node_dim, hidden_dim)
    p["pb"] = lin_b(ks[next(k)], node_dim, hidden_dim)
    # encoder GCNs (biases kept for the reference; kernel drops them -> BN cancels them)
    p["cw0"] = lin_w(ks[next(k)], node_dim, hidden_dim)
    p["cb0"] = lin_b(ks[next(k)], node_dim, hidden_dim)
    p["cw1"] = lin_w(ks[next(k)], hidden_dim, hidden_dim)
    p["cb1"] = lin_b(ks[next(k)], hidden_dim, hidden_dim)
    p["cw2"] = lin_w(ks[next(k)], hidden_dim, hidden_dim)
    p["cb2"] = lin_b(ks[next(k)], hidden_dim, hidden_dim)
    # batch norms (affine, PyTorch defaults)
    for i in range(3):
        p[f"g{i}"] = jnp.ones((1, hidden_dim), jnp.float32)
        p[f"be{i}"] = jnp.zeros((1, hidden_dim), jnp.float32)
    # decoder GCNs
    p["dw0"] = lin_w(ks[next(k)], hidden_dim, hidden_dim)
    p["db0"] = lin_b(ks[next(k)], hidden_dim, hidden_dim)
    p["dw1"] = lin_w(ks[next(k)], hidden_dim, hidden_dim)
    p["db1"] = lin_b(ks[next(k)], hidden_dim, hidden_dim)
    p["dw2"] = lin_w(ks[next(k)], hidden_dim, node_dim)
    p["db2"] = lin_b(ks[next(k)], hidden_dim, node_dim)
    return p


def _pad_w(w, dpad=DPAD):
    fi, fo = w.shape
    return jnp.pad(w, ((0, dpad - fi), (0, dpad - fo)))


def _pad_row(v, dpad=DPAD):
    return jnp.pad(v, ((0, 0), (0, dpad - v.shape[1])))


def prepare_static_state(params, edge_index, num_nodes):
    """One-time packing (per params / graph) hoisted off the per-call path."""
    a_hat = build_normalized_adjacency(edge_index, num_nodes)
    w_slab = jnp.stack([
        _pad_w(params["cw0"]), _pad_w(params["cw1"]), _pad_w(params["cw2"]),
        _pad_w(params["dw0"]), _pad_w(params["dw1"]), _pad_w(params["dw2"]),
    ]).astype(jnp.bfloat16)                          # [6, DPAD, DPAD] bf16
    v_static = jnp.concatenate([
        _pad_row(params["g0"]), _pad_row(params["g1"]), _pad_row(params["g2"]),
        _pad_row(params["be0"]), _pad_row(params["be1"]), _pad_row(params["be2"]),
        _pad_row(params["db0"]), _pad_row(params["db1"]), _pad_row(params["db2"]),
    ], axis=0)                                       # [9, DPAD] f32
    return {"a_hat": a_hat, "w_slab": w_slab, "v_static": v_static}


@jax.jit
def code_diffusion_forward(x, t, a_hat, w_slab, v_static, time_params):
    n, node_dim = x.shape
    hidden_dim = time_params["tw1"].shape[0]

    # ---- time path (tiny M=1 matmuls, XLA fuses it) ------------------------
    silu = lambda u: u * jax.nn.sigmoid(u)
    sin_emb = sinusoidal_embedding(t, hidden_dim)
    te = silu(sin_emb @ time_params["tw1"] + time_params["tb1"]) \
        @ time_params["tw2"] + time_params["tb2"]
    t_proj = te @ time_params["pw"] + time_params["pb"]          # [1, hidden]
    t_row = _pad_row(t_proj)                                     # [1, DPAD]

    x_pad = jnp.pad(x, ((0, 0), (0, DPAD - node_dim)))           # lane-dense input

    vmem = pl.BlockSpec(memory_space=pltpu.MemorySpace.VMEM)
    out = pl.pallas_call(
        diffusion_fwd_kernel,
        out_shape=jax.ShapeDtypeStruct((n, DPAD), jnp.float32),
        in_specs=[vmem, vmem, vmem, vmem, vmem],
        out_specs=vmem,
        compiler_params=pltpu.CompilerParams(vmem_limit_bytes=16 * 1024 * 1024),
    )(x_pad, a_hat, w_slab, v_static, t_row)
    return out[:, :node_dim]


# ----------------------------------------------------------------------------
# Pure-JAX f32 reference (matches the PyTorch forward, incl. encoder biases)
# ----------------------------------------------------------------------------
def reference_forward(x, edge_index, t, p, hidden_dim):
    n = x.shape[0]
    a = build_normalized_adjacency(edge_index, n)
    silu = lambda u: u * jax.nn.sigmoid(u)
    te = silu(sinusoidal_embedding(t, hidden_dim) @ p["tw1"] + p["tb1"]) @ p["tw2"] + p["tb2"]
    tp = te @ p["pw"] + p["pb"]

    def bn(h, g, b):
        mu = h.mean(0, keepdims=True)
        var = ((h - mu) ** 2).mean(0, keepdims=True)
        return g * (h - mu) / jnp.sqrt(var + 1e-5) + b

    h = x
    for i in range(3):
        h = a @ (h @ p[f"cw{i}"]) + p[f"cb{i}"]
        h = bn(h, p[f"g{i}"], p[f"be{i}"])
        h = silu(h + tp)
    for i in range(3):
        h = a @ (h @ p[f"dw{i}"]) + p[f"db{i}"]
        if i < 2:
            h = silu(h)
    return h


# ----------------------------------------------------------------------------
if __name__ == "__main__":
    N, NODE_DIM, HIDDEN = 16, 16, 32

    key = jax.random.PRNGKey(0)
    kx, kp = jax.random.split(key)
    x = jax.random.normal(kx, (N, NODE_DIM), jnp.float32)

    # deterministic ring graph (both directions)
    src = jnp.arange(N, dtype=jnp.int32)
    dst = (src + 1) % N
    edge_index = jnp.stack(
        [jnp.concatenate([src, dst]), jnp.concatenate([dst, src])], axis=0
    )

    t = jnp.array([7], dtype=jnp.int32)
    params = init_params(kp, NODE_DIM, HIDDEN)

    # one-time packing (hoisted off the per-call path)
    static_state = prepare_static_state(params, edge_index, N)
    time_params = {k: params[k] for k in ("tw1", "tb1", "tw2", "tb2", "pw", "pb")}

    out = code_diffusion_forward(
        x, t, static_state["a_hat"], static_state["w_slab"],
        static_state["v_static"], time_params)
    out = jax.block_until_ready(out)

    ref = reference_forward(x, edge_index, t, params, HIDDEN)
    assert out.shape == (N, NODE_DIM)
    # Kernel quantizes GCN weights / activations to bf16 on the MXU path;
    # tolerance relaxed accordingly vs. the f32 reference.
    assert jnp.allclose(out, ref, atol=5e-2, rtol=5e-2), "mismatch vs reference"

    print("KERNEL_OK")
</pallas_src>

<mosaic_0001>
module attributes {stable_mosaic.version = 11 : i64} {
  func.func @diffusion_fwd_kernel(%arg0: memref<16x128xf32, #tpu.memory_space<vmem>>, %arg1: memref<16x16xf32, #tpu.memory_space<vmem>>, %arg2: memref<6x128x128xbf16, #tpu.memory_space<vmem>>, %arg3: memref<9x128xf32, #tpu.memory_space<vmem>>, %arg4: memref<1x128xf32, #tpu.memory_space<vmem>>, %arg5: memref<16x128xf32, #tpu.memory_space<vmem>>) attributes {dimension_semantics = [], scalar_prefetch = 0 : i64, scratch_operands = 0 : i64, tpu.core_type = #tpu.core_type<tc>} {
    %c0 = arith.constant 0 : index
    %c0_0 = arith.constant 0 : index
    %0 = vector.load %arg0[%c0, %c0_0] : memref<16x128xf32, #tpu.memory_space<vmem>>, vector<16x128xf32>
    %c0_1 = arith.constant 0 : index
    %c0_2 = arith.constant 0 : index
    %1 = vector.load %arg1[%c0_1, %c0_2] : memref<16x16xf32, #tpu.memory_space<vmem>>, vector<16x16xf32>
    %c0_3 = arith.constant 0 : index
    %c0_4 = arith.constant 0 : index
    %2 = vector.load %arg3[%c0_3, %c0_4] : memref<9x128xf32, #tpu.memory_space<vmem>>, vector<9x128xf32>
    %c0_5 = arith.constant 0 : index
    %c0_6 = arith.constant 0 : index
    %3 = vector.load %arg4[%c0_5, %c0_6] : memref<1x128xf32, #tpu.memory_space<vmem>>, vector<1x128xf32>
    %4 = vector.extract_strided_slice %2 {offsets = [3, 0], sizes = [1, 128], strides = [1, 1]} : vector<9x128xf32> to vector<1x128xf32>
    %5 = arith.addf %4, %3 : vector<1x128xf32>
    %c0_7 = arith.constant 0 : index
    %c0_8 = arith.constant 0 : index
    %c0_9 = arith.constant 0 : index
    %6 = vector.load %arg2[%c0_7, %c0_8, %c0_9] : memref<6x128x128xbf16, #tpu.memory_space<vmem>>, vector<1x128x128xbf16>
    %7 = vector.shape_cast %6 : vector<1x128x128xbf16> to vector<128x128xbf16>
    %8 = arith.truncf %0 : vector<16x128xf32> to vector<16x128xbf16>
    %cst = arith.constant dense<0.000000e+00> : vector<16x128xf32>
    %9 = tpu.matmul %8, %7, %cst {dimension_numbers = #tpu.dot_dimension_numbers<[1], [0], [0], [1], [0, 0, 1, 1], [], []>} : vector<16x128xbf16>, vector<128x128xbf16>, vector<16x128xf32> -> vector<16x128xf32>
    %cst_10 = arith.constant dense<0.000000e+00> : vector<16x128xf32>
    %10 = tpu.matmul %1, %9, %cst_10 {dimension_numbers = #tpu.dot_dimension_numbers<[1], [0], [0], [1], [0, 0, 1, 1], [], []>} : vector<16x16xf32>, vector<16x128xf32>, vector<16x128xf32> -> vector<16x128xf32>
    %11 = vector.extract_strided_slice %2 {offsets = [0, 0], sizes = [1, 128], strides = [1, 1]} : vector<9x128xf32> to vector<1x128xf32>
    %cst_11 = arith.constant dense<0.000000e+00> : vector<128xf32>
    %12 = vector.multi_reduction <add>, %10, %cst_11 [0] : vector<16x128xf32> to vector<128xf32>
    %13 = vector.shape_cast %12 : vector<128xf32> to vector<1x128xf32>
    %cst_12 = arith.constant 6.250000e-02 : f32
    %14 = vector.broadcast %cst_12 : f32 to vector<1x128xf32>
    %15 = arith.mulf %13, %14 : vector<1x128xf32>
    %16 = vector.broadcast %15 : vector<1x128xf32> to vector<16x128xf32>
    %17 = arith.subf %10, %16 : vector<16x128xf32>
    %18 = arith.mulf %17, %17 : vector<16x128xf32>
    %cst_13 = arith.constant dense<0.000000e+00> : vector<128xf32>
    %19 = vector.multi_reduction <add>, %18, %cst_13 [0] : vector<16x128xf32> to vector<128xf32>
    %20 = vector.shape_cast %19 : vector<128xf32> to vector<1x128xf32>
    %cst_14 = arith.constant 6.250000e-02 : f32
    %21 = vector.broadcast %cst_14 : f32 to vector<1x128xf32>
    %22 = arith.mulf %20, %21 : vector<1x128xf32>
    %cst_15 = arith.constant 9.99999974E-6 : f32
    %23 = vector.broadcast %cst_15 : f32 to vector<1x128xf32>
    %24 = arith.addf %22, %23 : vector<1x128xf32>
    %25 = math.rsqrt %24 : vector<1x128xf32>
    %26 = arith.mulf %11, %25 : vector<1x128xf32>
    %27 = vector.broadcast %26 : vector<1x128xf32> to vector<16x128xf32>
    %28 = arith.mulf %17, %27 : vector<16x128xf32>
    %29 = vector.broadcast %5 : vector<1x128xf32> to vector<16x128xf32>
    %30 = arith.addf %28, %29 : vector<16x128xf32>
    %31 = arith.negf %30 : vector<16x128xf32>
    %32 = math.exp %31 : vector<16x128xf32>
    %cst_16 = arith.constant 1.000000e+00 : f32
    %33 = vector.broadcast %cst_16 : f32 to vector<16x128xf32>
    %34 = arith.addf %33, %32 : vector<16x128xf32>
    %35 = arith.divf %33, %34 : vector<16x128xf32>
    %36 = arith.mulf %30, %35 : vector<16x128xf32>
    %37 = vector.extract_strided_slice %2 {offsets = [4, 0], sizes = [1, 128], strides = [1, 1]} : vector<9x128xf32> to vector<1x128xf32>
    %38 = arith.addf %37, %3 : vector<1x128xf32>
    %c1 = arith.constant 1 : index
    %c0_17 = arith.constant 0 : index
    %c0_18 = arith.constant 0 : index
    %39 = vector.load %arg2[%c1, %c0_17, %c0_18] : memref<6x128x128xbf16, #tpu.memory_space<vmem>>, vector<1x128x128xbf16>
    %40 = vector.shape_cast %39 : vector<1x128x128xbf16> to vector<128x128xbf16>
    %41 = arith.truncf %36 : vector<16x128xf32> to vector<16x128xbf16>
    %cst_19 = arith.constant dense<0.000000e+00> : vector<16x128xf32>
    %42 = tpu.matmul %41, %40, %cst_19 {dimension_numbers = #tpu.dot_dimension_numbers<[1], [0], [0], [1], [0, 0, 1, 1], [], []>} : vector<16x128xbf16>, vector<128x128xbf16>, vector<16x128xf32> -> vector<16x128xf32>
    %cst_20 = arith.constant dense<0.000000e+00> : vector<16x128xf32>
    %43 = tpu.matmul %1, %42, %cst_20 {dimension_numbers = #tpu.dot_dimension_numbers<[1], [0], [0], [1], [0, 0, 1, 1], [], []>} : vector<16x16xf32>, vector<16x128xf32>, vector<16x128xf32> -> vector<16x128xf32>
    %44 = vector.extract_strided_slice %2 {offsets = [1, 0], sizes = [1, 128], strides = [1, 1]} : vector<9x128xf32> to vector<1x128xf32>
    %cst_21 = arith.constant dense<0.000000e+00> : vector<128xf32>
    %45 = vector.multi_reduction <add>, %43, %cst_21 [0] : vector<16x128xf32> to vector<128xf32>
    %46 = vector.shape_cast %45 : vector<128xf32> to vector<1x128xf32>
    %cst_22 = arith.constant 6.250000e-02 : f32
    %47 = vector.broadcast %cst_22 : f32 to vector<1x128xf32>
    %48 = arith.mulf %46, %47 : vector<1x128xf32>
    %49 = vector.broadcast %48 : vector<1x128xf32> to vector<16x128xf32>
    %50 = arith.subf %43, %49 : vector<16x128xf32>
    %51 = arith.mulf %50, %50 : vector<16x128xf32>
    %cst_23 = arith.constant dense<0.000000e+00> : vector<128xf32>
    %52 = vector.multi_reduction <add>, %51, %cst_23 [0] : vector<16x128xf32> to vector<128xf32>
    %53 = vector.shape_cast %52 : vector<128xf32> to vector<1x128xf32>
    %cst_24 = arith.constant 6.250000e-02 : f32
    %54 = vector.broadcast %cst_24 : f32 to vector<1x128xf32>
    %55 = arith.mulf %53, %54 : vector<1x128xf32>
    %cst_25 = arith.constant 9.99999974E-6 : f32
    %56 = vector.broadcast %cst_25 : f32 to vector<1x128xf32>
    %57 = arith.addf %55, %56 : vector<1x128xf32>
    %58 = math.rsqrt %57 : vector<1x128xf32>
    %59 = arith.mulf %44, %58 : vector<1x128xf32>
    %60 = vector.broadcast %59 : vector<1x128xf32> to vector<16x128xf32>
    %61 = arith.mulf %50, %60 : vector<16x128xf32>
    %62 = vector.broadcast %38 : vector<1x128xf32> to vector<16x128xf32>
    %63 = arith.addf %61, %62 : vector<16x128xf32>
    %64 = arith.negf %63 : vector<16x128xf32>
    %65 = math.exp %64 : vector<16x128xf32>
    %cst_26 = arith.constant 1.000000e+00 : f32
    %66 = vector.broadcast %cst_26 : f32 to vector<16x128xf32>
    %67 = arith.addf %66, %65 : vector<16x128xf32>
    %68 = arith.divf %66, %67 : vector<16x128xf32>
    %69 = arith.mulf %63, %68 : vector<16x128xf32>
    %70 = vector.extract_strided_slice %2 {offsets = [5, 0], sizes = [1, 128], strides = [1, 1]} : vector<9x128xf32> to vector<1x128xf32>
    %71 = arith.addf %70, %3 : vector<1x128xf32>
    %c2 = arith.constant 2 : index
    %c0_27 = arith.constant 0 : index
    %c0_28 = arith.constant 0 : index
    %72 = vector.load %arg2[%c2, %c0_27, %c0_28] : memref<6x128x128xbf16, #tpu.memory_space<vmem>>, vector<1x128x128xbf16>
    %73 = vector.shape_cast %72 : vector<1x128x128xbf16> to vector<128x128xbf16>
    %74 = arith.truncf %69 : vector<16x128xf32> to vector<16x128xbf16>
    %cst_29 = arith.constant dense<0.000000e+00> : vector<16x128xf32>
    %75 = tpu.matmul %74, %73, %cst_29 {dimension_numbers = #tpu.dot_dimension_numbers<[1], [0], [0], [1], [0, 0, 1, 1], [], []>} : vector<16x128xbf16>, vector<128x128xbf16>, vector<16x128xf32> -> vector<16x128xf32>
    %cst_30 = arith.constant dense<0.000000e+00> : vector<16x128xf32>
    %76 = tpu.matmul %1, %75, %cst_30 {dimension_numbers = #tpu.dot_dimension_numbers<[1], [0], [0], [1], [0, 0, 1, 1], [], []>} : vector<16x16xf32>, vector<16x128xf32>, vector<16x128xf32> -> vector<16x128xf32>
    %77 = vector.extract_strided_slice %2 {offsets = [2, 0], sizes = [1, 128], strides = [1, 1]} : vector<9x128xf32> to vector<1x128xf32>
    %cst_31 = arith.constant dense<0.000000e+00> : vector<128xf32>
    %78 = vector.multi_reduction <add>, %76, %cst_31 [0] : vector<16x128xf32> to vector<128xf32>
    %79 = vector.shape_cast %78 : vector<128xf32> to vector<1x128xf32>
    %cst_32 = arith.constant 6.250000e-02 : f32
    %80 = vector.broadcast %cst_32 : f32 to vector<1x128xf32>
    %81 = arith.mulf %79, %80 : vector<1x128xf32>
    %82 = vector.broadcast %81 : vector<1x128xf32> to vector<16x128xf32>
    %83 = arith.subf %76, %82 : vector<16x128xf32>
    %84 = arith.mulf %83, %83 : vector<16x128xf32>
    %cst_33 = arith.constant dense<0.000000e+00> : vector<128xf32>
    %85 = vector.multi_reduction <add>, %84, %cst_33 [0] : vector<16x128xf32> to vector<128xf32>
    %86 = vector.shape_cast %85 : vector<128xf32> to vector<1x128xf32>
    %cst_34 = arith.constant 6.250000e-02 : f32
    %87 = vector.broadcast %cst_34 : f32 to vector<1x128xf32>
    %88 = arith.mulf %86, %87 : vector<1x128xf32>
    %cst_35 = arith.constant 9.99999974E-6 : f32
    %89 = vector.broadcast %cst_35 : f32 to vector<1x128xf32>
    %90 = arith.addf %88, %89 : vector<1x128xf32>
    %91 = math.rsqrt %90 : vector<1x128xf32>
    %92 = arith.mulf %77, %91 : vector<1x128xf32>
    %93 = vector.broadcast %92 : vector<1x128xf32> to vector<16x128xf32>
    %94 = arith.mulf %83, %93 : vector<16x128xf32>
    %95 = vector.broadcast %71 : vector<1x128xf32> to vector<16x128xf32>
    %96 = arith.addf %94, %95 : vector<16x128xf32>
    %97 = arith.negf %96 : vector<16x128xf32>
    %98 = math.exp %97 : vector<16x128xf32>
    %cst_36 = arith.constant 1.000000e+00 : f32
    %99 = vector.broadcast %cst_36 : f32 to vector<16x128xf32>
    %100 = arith.addf %99, %98 : vector<16x128xf32>
    %101 = arith.divf %99, %100 : vector<16x128xf32>
    %102 = arith.mulf %96, %101 : vector<16x128xf32>
    %c3 = arith.constant 3 : index
    %c0_37 = arith.constant 0 : index
    %c0_38 = arith.constant 0 : index
    %103 = vector.load %arg2[%c3, %c0_37, %c0_38] : memref<6x128x128xbf16, #tpu.memory_space<vmem>>, vector<1x128x128xbf16>
    %104 = vector.shape_cast %103 : vector<1x128x128xbf16> to vector<128x128xbf16>
    %105 = arith.truncf %102 : vector<16x128xf32> to vector<16x128xbf16>
    %cst_39 = arith.constant dense<0.000000e+00> : vector<16x128xf32>
    %106 = tpu.matmul %105, %104, %cst_39 {dimension_numbers = #tpu.dot_dimension_numbers<[1], [0], [0], [1], [0, 0, 1, 1], [], []>} : vector<16x128xbf16>, vector<128x128xbf16>, vector<16x128xf32> -> vector<16x128xf32>
    %cst_40 = arith.constant dense<0.000000e+00> : vector<16x128xf32>
    %107 = tpu.matmul %1, %106, %cst_40 {dimension_numbers = #tpu.dot_dimension_numbers<[1], [0], [0], [1], [0, 0, 1, 1], [], []>} : vector<16x16xf32>, vector<16x128xf32>, vector<16x128xf32> -> vector<16x128xf32>
    %108 = vector.extract_strided_slice %2 {offsets = [6, 0], sizes = [1, 128], strides = [1, 1]} : vector<9x128xf32> to vector<1x128xf32>
    %109 = vector.broadcast %108 : vector<1x128xf32> to vector<16x128xf32>
    %110 = arith.addf %107, %109 : vector<16x128xf32>
    %111 = arith.negf %110 : vector<16x128xf32>
    %112 = math.exp %111 : vector<16x128xf32>
    %cst_41 = arith.constant 1.000000e+00 : f32
    %113 = vector.broadcast %cst_41 : f32 to vector<16x128xf32>
    %114 = arith.addf %113, %112 : vector<16x128xf32>
    %115 = arith.divf %113, %114 : vector<16x128xf32>
    %116 = arith.mulf %110, %115 : vector<16x128xf32>
    %c4 = arith.constant 4 : index
    %c0_42 = arith.constant 0 : index
    %c0_43 = arith.constant 0 : index
    %117 = vector.load %arg2[%c4, %c0_42, %c0_43] : memref<6x128x128xbf16, #tpu.memory_space<vmem>>, vector<1x128x128xbf16>
    %118 = vector.shape_cast %117 : vector<1x128x128xbf16> to vector<128x128xbf16>
    %119 = arith.truncf %116 : vector<16x128xf32> to vector<16x128xbf16>
    %cst_44 = arith.constant dense<0.000000e+00> : vector<16x128xf32>
    %120 = tpu.matmul %119, %118, %cst_44 {dimension_numbers = #tpu.dot_dimension_numbers<[1], [0], [0], [1], [0, 0, 1, 1], [], []>} : vector<16x128xbf16>, vector<128x128xbf16>, vector<16x128xf32> -> vector<16x128xf32>
    %cst_45 = arith.constant dense<0.000000e+00> : vector<16x128xf32>
    %121 = tpu.matmul %1, %120, %cst_45 {dimension_numbers = #tpu.dot_dimension_numbers<[1], [0], [0], [1], [0, 0, 1, 1], [], []>} : vector<16x16xf32>, vector<16x128xf32>, vector<16x128xf32> -> vector<16x128xf32>
    %122 = vector.extract_strided_slice %2 {offsets = [7, 0], sizes = [1, 128], strides = [1, 1]} : vector<9x128xf32> to vector<1x128xf32>
    %123 = vector.broadcast %122 : vector<1x128xf32> to vector<16x128xf32>
    %124 = arith.addf %121, %123 : vector<16x128xf32>
    %125 = arith.negf %124 : vector<16x128xf32>
    %126 = math.exp %125 : vector<16x128xf32>
    %cst_46 = arith.constant 1.000000e+00 : f32
    %127 = vector.broadcast %cst_46 : f32 to vector<16x128xf32>
    %128 = arith.addf %127, %126 : vector<16x128xf32>
    %129 = arith.divf %127, %128 : vector<16x128xf32>
    %130 = arith.mulf %124, %129 : vector<16x128xf32>
    %c5 = arith.constant 5 : index
    %c0_47 = arith.constant 0 : index
    %c0_48 = arith.constant 0 : index
    %131 = vector.load %arg2[%c5, %c0_47, %c0_48] : memref<6x128x128xbf16, #tpu.memory_space<vmem>>, vector<1x128x128xbf16>
    %132 = vector.shape_cast %131 : vector<1x128x128xbf16> to vector<128x128xbf16>
    %133 = arith.truncf %130 : vector<16x128xf32> to vector<16x128xbf16>
    %cst_49 = arith.constant dense<0.000000e+00> : vector<16x128xf32>
    %134 = tpu.matmul %133, %132, %cst_49 {dimension_numbers = #tpu.dot_dimension_numbers<[1], [0], [0], [1], [0, 0, 1, 1], [], []>} : vector<16x128xbf16>, vector<128x128xbf16>, vector<16x128xf32> -> vector<16x128xf32>
    %cst_50 = arith.constant dense<0.000000e+00> : vector<16x128xf32>
    %135 = tpu.matmul %1, %134, %cst_50 {dimension_numbers = #tpu.dot_dimension_numbers<[1], [0], [0], [1], [0, 0, 1, 1], [], []>} : vector<16x16xf32>, vector<16x128xf32>, vector<16x128xf32> -> vector<16x128xf32>
    %136 = vector.extract_strided_slice %2 {offsets = [8, 0], sizes = [1, 128], strides = [1, 1]} : vector<9x128xf32> to vector<1x128xf32>
    %137 = vector.broadcast %136 : vector<1x128xf32> to vector<16x128xf32>
    %138 = arith.addf %135, %137 : vector<16x128xf32>
    %c0_51 = arith.constant 0 : index
    %c0_52 = arith.constant 0 : index
    %139 = vector.load %arg5[%c0_51, %c0_52] : memref<16x128xf32, #tpu.memory_space<vmem>>, vector<16x128xf32>
    tpu.vector_store %arg5[%c0_51, %c0_52], %138 {strides = array<i32>} : memref<16x128xf32, #tpu.memory_space<vmem>>, vector<16x128xf32>,
    return
  }
}

</mosaic_0001>

<bundles_post_ra>
// kernel: code_diffusion_forward.1
= control target key start
LH: loop header
LB: loop body
LE: loop exit
PB: predicated region body
PF: predicated region fallthrough
CT: control target
= control target key end

     0   :  { %10 = vsyncpa [#allocation3], 0  ;;  %s2034_s0 = inlined_call_operand.vmem [shape: f32[16,128], index: 0, kind: input, shape index: {}]   ;;  %s2035_s1 = inlined_call_operand.vmem [shape: f32[16,16], index: 1, kind: input, shape index: {}]   ;;  %s2036_s2 = inlined_call_operand.hbm [shape: bf16[6,128,128], index: 2, kind: input, shape index: {}]   ;;  %s2037_s3 = inlined_call_operand.vmem [shape: f32[9,128], index: 3, kind: input, shape index: {}]   ;;  %s2038_s4 = inlined_call_operand.vmem [shape: f32[1,128], index: 4, kind: input, shape index: {}]   ;;  %s2039_s5 = inlined_call_operand.hbm [shape: f32[16,128], index: 5, kind: output, shape index: {}]  }
   0x1   :  { %11 = vsyncpa [#allocation4], 0  ;;  %s1840_s18 = smov [#allocation2]   ;;  %s1792_s22 = scalar_lea.hbm %s2036_s2, 6144 }
   0x2   :  { %s21_s19 = sshll.u32 %s1840_s18, 4  ;;  %p1793_p0 = scmp.ne.s32.totalorder %s2036_s2, %s1792_s22  ;;  %s22_s19 = int_to_ptr.vmem [resolvable:$true] %s21_s19 }
   0x3   :  { %p1796_p1 = scmp.lt.u32.totalorder %s1792_s22, %s2036_s2 }
   0x5   :  { %p1798_p2 = pnand %p1796_p1, %p1793_p0 }
   0x7   :  { %1801 = shalt.err (!%p1798_p2)
}
   0x8   :  { %s1802_s27 = scalar_lea.vmem %s22_s19, 6144  ;;  %p1807_p4 = scmp.lt.s32.totalorder %s22_s19, %s22_s19 }
   0x9   :  { %p1803_p3 = scmp.ne.s32.totalorder %s22_s19, %s1802_s27  ;;  %p1808_p5 = scmp.lt.s32.totalorder %s1802_s27, %s1802_s27 }
   0xb   :  { %p1809_p6 = por %p1808_p5, %p1807_p4 }
   0xd   :  { %p1810_p7 = pnand %p1809_p6, %p1803_p3 }
   0xf   :  { %1813 = shalt.err (!%p1810_p7)
}
  0x10   :  { %s1841_s28 = smov 64   ;;  %s1842_s29 = smov 4  }
  0x11   :  { %27 = dma.hbm_to_vmem [thread:$0]  %s2036_s2, 6144, %s22_s19, [#allocation3], %s1841_s28, %s1841_s28, %s1842_s29  }
  0x12   :  { %1836 = dma.done.wait [#allocation3], 6144  }
  0x13   :  { %1837 = vsyncadd [#allocation3], 4294961152  ;;  %v1843_v0 = vmov 0.0   ;;  %vm1844_vm0 = vmmov 0   ;;  %v1698_v1 = vld [vmem:[#allocation2] sm:$0xff]   ;;  %v1699_v2 = vld [vmem:[#allocation2 + $0x8] sm:$0xff]   ;;  %v261_v50 = vlaneseq }
  0x14   :  { %1504 = vmatprep.subr.bf16.mxu0 %v1843_v0  ;;  %1520 = vmatprep.mubr.msk.bf16.mxu0 %vm1844_vm0, %v1843_v0  ;;  %v1700_v3 = vld [vmem:[#allocation2 + $0x10] sm:$0xff]   ;;  %v1701_v4 = vld [vmem:[#allocation2 + $0x18] sm:$0xff]   ;;  %v1702_v5 = vld [vmem:[#allocation2 + $0x20] sm:$0xff]   ;;  %vm156_vm1 = vcmask 130048   ;;  %s1845_s17 = smov [#allocation5]  }
  0x15   :  { %1505 = vmatpush3.bf16.msra.mxu0 %v1698_v1  ;;  %v1703_v6 = vld [vmem:[#allocation2 + $0x28] sm:$0xff]   ;;  %v1704_v7 = vld [vmem:[#allocation2 + $0x30] sm:$0xff]   ;;  %v1705_v8 = vld [vmem:[#allocation2 + $0x38] sm:$0xff]   ;;  %v1933_v51 = vshrl.u32 %v261_v50, 7  ;;  %s1342_s18 = sshll.u32 %s1845_s17, 4  ;;  %s1343_s18 = int_to_ptr.vmem [resolvable:$true] %s1342_s18 }
  0x16   :  { %1506 = vmatprep.subr.bf16.mxu0 %v1843_v0  ;;  %v36_v9 = vld [vmem:[%s2034_s0] sm:$0xff]  ;;  %v37_v10 = vld [vmem:[%s2034_s0 + $0x8] sm:$0xff]  ;;  %v1708_v21 = vld [vmem:[#allocation2 + $0x50] sm:$0xff]   ;;  %s1814_s19 = scalar_lea.vmem %s1343_s18, 256  ;;  %p1819_p9 = scmp.lt.s32.totalorder %s1343_s18, %s1343_s18 }
  0x17   :  { %v66_v11 = vpack.c.bf16 %v37_v10, %v36_v9  ;;  %v1909_v12 = vld [vmem:[%s2035_s1] sm:$0xff]  ;;  %v1918_v18 = vld [vmem:[%s2035_s1 + $0x8] sm:$0xff]  ;;  %v1709_v22 = vld [vmem:[#allocation2 + $0x58] sm:$0xff]   ;;  %v263_v55 = vsub.s32 0, %v1933_v51  ;;  %v269_v56 = vsub.s32 3, %v1933_v51  ;;  %p1815_p8 = scmp.ne.s32.totalorder %s1343_s18, %s1814_s19  ;;  %p1820_p10 = scmp.lt.s32.totalorder %s1814_s19, %s1814_s19 }
  0x18   :  { %1528 = vmatprep.mubr.msk.f32.mxu1 %vm156_vm1, %v1909_v12  ;;  %v1706_v19 = vld [vmem:[#allocation2 + $0x40] sm:$0xff]   ;;  %v1707_v20 = vld [vmem:[#allocation2 + $0x48] sm:$0xff]   ;;  %v1712_v25 = vld [vmem:[#allocation2 + $0x70] sm:$0xff]  }
  0x19   :  { %1507 = vmatpush3.bf16.msra.mxu0 %v1699_v2  ;;  %v1710_v23 = vld [vmem:[#allocation2 + $0x60] sm:$0xff]   ;;  %v1711_v24 = vld [vmem:[#allocation2 + $0x68] sm:$0xff]   ;;  %v1713_v26 = vld [vmem:[#allocation2 + $0x78] sm:$0xff]   ;;  %p1821_p11 = por %p1820_p10, %p1819_p9 }
  0x1a   :  { %1508 = vmatprep.subr.bf16.mxu0 %v1843_v0  ;;  %v1354_v52 = vld [vmem:[%s2038_s4] ss:$0 sm:$0xff] }
  0x1b   :  { %v1941_v53 = vld [vmem:[%s2037_s3] sm:$0xff]  ;;  %p1822_p12 = pnand %p1821_p11, %p1815_p8 }
  0x1c   :  { %v1944_v54 = vadd.f32 %v1354_v52, %v1941_v53  ;;  %v494_v52 = vsub.s32 1, %v1933_v51 }
  0x1d   :  { %1509 = vmatpush3.bf16.msra.mxu0 %v1700_v3 }
  0x1e   :  { %1510 = vmatprep.subr.bf16.mxu0 %v1843_v0  ;;  %v270_v60 = vrot.slane %v1944_v54, %v269_v56 }
  0x21   :  { %1511 = vmatpush3.bf16.msra.mxu0 %v1701_v4 }
  0x22   :  { %1512 = vmatprep.subr.bf16.mxu0 %v1843_v0 }
  0x25   :  { %1513 = vmatpush3.bf16.msra.mxu0 %v1702_v5 }
  0x26   :  { %1514 = vmatprep.subr.bf16.mxu0 %v1843_v0 }
  0x29   :  { %1515 = vmatpush3.bf16.msra.mxu0 %v1703_v6 }
  0x2a   :  { %1516 = vmatprep.subr.bf16.mxu0 %v1843_v0 }
  0x2d   :  { %1517 = vmatpush3.bf16.msra.mxu0 %v1704_v7 }
  0x2e   :  { %1518 = vmatprep.subr.bf16.mxu0 %v1843_v0 }
  0x31   :  { %1519 = vmatpush3.bf16.msra.mxu0 %v1705_v8 }
  0x34   :  { %1521 = vmatmul.mubr.bf16.vlgmr.msra.gmra.mrb[0].mxu0 %v66_v11 }
  0x35   :  { %1555 = vmatprep.mubr.msk.f32.mxu0 %vm156_vm1, %v1909_v12 }
 0x107   :  { %v149_v13 = vpop.f32.mrb[0].mxu0 }
 0x108   :  { %v1522_v14 = vpop.f32.mrb[1].mxu0 }
 0x109   :  { %v152_v15 = vpop.f32.mrb[2].mxu0 }
 0x10a   :  { %v1666_v16 = vpack.c.bf16 %v152_v15, %v149_v13  ;;  %v1523_v17 = vpop.f32.mrb[3].mxu0 }
 0x10c   :  { %1667 = vmatprep.subr.bf16.mxu1 %v1666_v16 }
 0x10d   :  { %1669 = vmatpush3.bf16.msra.mxu1 %v1666_v16 }
 0x10e   :  { %1531 = vmatprep.subr.bf16.mxu1 %v1843_v0 }
 0x110   :  { %1529 = vmatmul.mubr.msk.f32.vlgmr.msra.gmra.mrb[0].mxu1 %vm156_vm1, %v1918_v18 }
 0x111   :  { %1547 = vmatprep.mubr.msk.bf16.mxu1 %vm1844_vm0, %v1843_v0  ;;  %1532 = vmatpush3.bf16.msra.mxu1 %v1706_v19 }
 0x112   :  { %1533 = vmatprep.subr.bf16.mxu1 %v1843_v0 }
 0x115   :  { %1534 = vmatpush3.bf16.msra.mxu1 %v1707_v20  ;;  %v1714_v20 = vld [vmem:[#allocation2 + $0x80] sm:$0xff]  }
 0x116   :  { %1535 = vmatprep.subr.bf16.mxu1 %v1843_v0 }
 0x119   :  { %1536 = vmatpush3.bf16.msra.mxu1 %v1708_v21  ;;  %v1715_v21 = vld [vmem:[#allocation2 + $0x88] sm:$0xff]  }
 0x11a   :  { %1537 = vmatprep.subr.bf16.mxu1 %v1843_v0 }
 0x11d   :  { %1538 = vmatpush3.bf16.msra.mxu1 %v1709_v22  ;;  %v1716_v22 = vld [vmem:[#allocation2 + $0x90] sm:$0xff]  }
 0x11e   :  { %1539 = vmatprep.subr.bf16.mxu1 %v1843_v0 }
 0x121   :  { %1540 = vmatpush3.bf16.msra.mxu1 %v1710_v23  ;;  %v1717_v23 = vld [vmem:[#allocation2 + $0x98] sm:$0xff]  }
 0x122   :  { %1541 = vmatprep.subr.bf16.mxu1 %v1843_v0 }
 0x125   :  { %1542 = vmatpush3.bf16.msra.mxu1 %v1711_v24  ;;  %v1718_v24 = vld [vmem:[#allocation2 + $0xa0] sm:$0xff]  }
 0x126   :  { %1543 = vmatprep.subr.bf16.mxu1 %v1843_v0 }
 0x129   :  { %1544 = vmatpush3.bf16.msra.mxu1 %v1712_v25  ;;  %v1719_v25 = vld [vmem:[#allocation2 + $0xa8] sm:$0xff]  }
 0x12a   :  { %1545 = vmatprep.subr.bf16.mxu1 %v1843_v0 }
 0x12d   :  { %1546 = vmatpush3.bf16.msra.mxu1 %v1713_v26  ;;  %v1720_v26 = vld [vmem:[#allocation2 + $0xb0] sm:$0xff]  }
 0x12e   :  { %1558 = vmatprep.subr.bf16.mxu1 %v1843_v0 }
 0x1e3   :  { %v1530_v27 = vpop.f32.mrb[0].mxu1 }
 0x1e4   :  { %v229_v28 = vpop.f32.mrb[1].mxu1 }
 0x1e5   :  { %v238_v29 = vadd.f32 %v1530_v27, %v229_v28 }
 0x1e7   :  { %v239_v30 = vrot.slane %v238_v29, 4 }
 0x1e9   :  { %v240_v31 = vadd.f32 %v239_v30, %v238_v29 }
 0x1eb   :  { %v241_v32 = vrot.slane %v240_v31, 2 }
 0x1ed   :  { %v242_v33 = vadd.f32 %v241_v32, %v240_v31 }
 0x1ef   :  { %v243_v34 = vrot.slane %v242_v33, 1 }
 0x1f1   :  { %v244_v35 = vadd.f32 %v243_v34, %v242_v33 }
 0x1f3   :  { %v245_v36 = vmul.f32 0.0625, %v244_v35 }
 0x1f5   :  { %v246_v37 = vsub.f32 %v229_v28, %v245_v36  ;;  %v247_v38 = vsub.f32 %v1530_v27, %v245_v36  ;;  %v1721_v27 = vld [vmem:[#allocation2 + $0xb8] sm:$0xff]  }
 0x1f7   :  { %v248_v39 = vmul.f32 %v246_v37, %v246_v37  ;;  %v249_v40 = vmul.f32 %v247_v38, %v247_v38 }
 0x1f9   :  { %v250_v41 = vadd.f32 %v249_v40, %v248_v39 }
 0x1fb   :  { %v251_v42 = vrot.slane %v250_v41, 4 }
 0x1fd   :  { %v252_v43 = vadd.f32 %v251_v42, %v250_v41 }
 0x1ff   :  { %v253_v44 = vrot.slane %v252_v43, 2 }
 0x201   :  { %v254_v45 = vadd.f32 %v253_v44, %v252_v43 }
 0x203   :  { %v255_v46 = vrot.slane %v254_v45, 1 }
 0x205   :  { %v256_v47 = vadd.f32 %v255_v46, %v254_v45 }
 0x207   :  { %v257_v48 = vmul.f32 0.0625, %v256_v47 }
 0x209   :  { %v258_v49 = vadd.f32 1e-05, %v257_v48 }
 0x20b   :  { %1746 = vrsqrt.f32 %v258_v49 }
 0x215   :  { %v1747_v57 = vpop.eup %1746 }
 0x216   :  { %v260_v58 = vmul.f32 %v1747_v57, %v1941_v53 }
 0x218   :  { %v264_v59 = vrot.slane %v260_v58, %v263_v55  ;;  %v500_v55 = vsub.s32 4, %v1933_v51 }
 0x21a   :  { %v265_v61 = vmul.f32 %v264_v59, %v246_v37  ;;  %v266_v62 = vmul.f32 %v264_v59, %v247_v38  ;;  %v501_v59 = vrot.slane %v1944_v54, %v500_v55 }
 0x21c   :  { %v271_v63 = vadd.f32 %v270_v60, %v265_v61  ;;  %v272_v1 = vadd.f32 %v270_v60, %v266_v62 }
 0x21e   :  { %v1365_v2 = vmul.f32 -1.442695, %v271_v63  ;;  %v1366_v3 = vmul.f32 -1.442695, %v272_v1 }
 0x220   :  { %1748 = vpow2.f32 %v1365_v2 }
 0x221   :  { %1750 = vpow2.f32 %v1366_v3 }
 0x22a   :  { %v1749_v4 = vpop.eup %1748 }
 0x22b   :  { %v1751_v5 = vpop.eup %1750  ;;  %v279_v6 = vadd.f32 1.0, %v1749_v4 }
 0x22c   :  { %v280_v7 = vadd.f32 1.0, %v1751_v5 }
 0x22d   :  { %1752 = vrcp.f32 %v279_v6 }
 0x22e   :  { %1754 = vrcp.f32 %v280_v7 }
 0x237   :  { %v1753_v8 = vpop.eup %1752 }
 0x238   :  { %v1755_v9 = vpop.eup %1754  ;;  %v285_v10 = vmul.f32 %v1753_v8, %v271_v63 }
 0x239   :  { %v286_v11 = vmul.f32 %v1755_v9, %v272_v1 }
 0x23b   :  { %v304_v13 = vpack.c.bf16 %v286_v11, %v285_v10 }
 0x23d   :  { %1548 = vmatmul.mubr.bf16.vlgmr.msra.gmra.mrb[4].mxu1 %v304_v13 }
 0x23e   :  { %1574 = vmatprep.mubr.msk.bf16.mxu1 %vm1844_vm0, %v1843_v0  ;;  %1559 = vmatpush3.bf16.msra.mxu1 %v1714_v20  ;;  %v1723_v20 = vld [vmem:[#allocation2 + $0xc8] sm:$0xff]  }
 0x23f   :  { %1560 = vmatprep.subr.bf16.mxu1 %v1843_v0 }
 0x242   :  { %1561 = vmatpush3.bf16.msra.mxu1 %v1715_v21  ;;  %v1724_v21 = vld [vmem:[#allocation2 + $0xd0] sm:$0xff]  }
 0x243   :  { %1562 = vmatprep.subr.bf16.mxu1 %v1843_v0 }
 0x246   :  { %1563 = vmatpush3.bf16.msra.mxu1 %v1716_v22  ;;  %v1725_v22 = vld [vmem:[#allocation2 + $0xd8] sm:$0xff]  }
 0x247   :  { %1564 = vmatprep.subr.bf16.mxu1 %v1843_v0 }
 0x24a   :  { %1565 = vmatpush3.bf16.msra.mxu1 %v1717_v23  ;;  %v1726_v23 = vld [vmem:[#allocation2 + $0xe0] sm:$0xff]  }
 0x24b   :  { %1566 = vmatprep.subr.bf16.mxu1 %v1843_v0 }
 0x24e   :  { %1567 = vmatpush3.bf16.msra.mxu1 %v1718_v24  ;;  %v1727_v24 = vld [vmem:[#allocation2 + $0xe8] sm:$0xff]  }
 0x24f   :  { %1568 = vmatprep.subr.bf16.mxu1 %v1843_v0 }
 0x252   :  { %1569 = vmatpush3.bf16.msra.mxu1 %v1719_v25  ;;  %v1728_v25 = vld [vmem:[#allocation2 + $0xf0] sm:$0xff]  }
 0x253   :  { %1570 = vmatprep.subr.bf16.mxu1 %v1843_v0 }
 0x256   :  { %1571 = vmatpush3.bf16.msra.mxu1 %v1720_v26  ;;  %v1729_v26 = vld [vmem:[#allocation2 + $0xf8] sm:$0xff]  }
 0x257   :  { %1572 = vmatprep.subr.bf16.mxu1 %v1843_v0 }
 0x25a   :  { %1573 = vmatpush3.bf16.msra.mxu1 %v1721_v27 }
 0x310   :  { %v387_v14 = vpop.f32.mrb[4].mxu1 }
 0x311   :  { %v1549_v15 = vpop.f32.mrb[5].mxu1 }
 0x312   :  { %v390_v16 = vpop.f32.mrb[6].mxu1 }
 0x313   :  { %v1670_v17 = vpack.c.bf16 %v390_v16, %v387_v14  ;;  %v1550_v19 = vpop.f32.mrb[7].mxu1 }
 0x314   :  { %v1722_v19 = vld [vmem:[#allocation2 + $0xc0] sm:$0xff]  }
 0x315   :  { %1671 = vmatprep.subr.bf16.mxu0 %v1670_v17 }
 0x316   :  { %1673 = vmatpush3.bf16.msra.mxu0 %v1670_v17 }
 0x319   :  { %1556 = vmatmul.mubr.msk.f32.vlgmr.msra.gmra.mrb[4].mxu0 %vm156_vm1, %v1918_v18 }
 0x31a   :  { %1582 = vmatprep.mubr.msk.f32.mxu0 %vm156_vm1, %v1909_v12 }
 0x3ec   :  { %v1557_v28 = vpop.f32.mrb[4].mxu0 }
 0x3ed   :  { %v460_v29 = vpop.f32.mrb[5].mxu0 }
 0x3ee   :  { %v469_v30 = vadd.f32 %v1557_v28, %v460_v29 }
 0x3f0   :  { %v470_v31 = vrot.slane %v469_v30, 4 }
 0x3f2   :  { %v471_v32 = vadd.f32 %v470_v31, %v469_v30 }
 0x3f4   :  { %v472_v33 = vrot.slane %v471_v32, 2 }
 0x3f6   :  { %v473_v34 = vadd.f32 %v472_v33, %v471_v32 }
 0x3f8   :  { %v474_v35 = vrot.slane %v473_v34, 1 }
 0x3fa   :  { %v475_v36 = vadd.f32 %v474_v35, %v473_v34 }
 0x3fc   :  { %v476_v37 = vmul.f32 0.0625, %v475_v36 }
 0x3fe   :  { %v477_v38 = vsub.f32 %v460_v29, %v476_v37  ;;  %v478_v39 = vsub.f32 %v1557_v28, %v476_v37 }
 0x400   :  { %v479_v40 = vmul.f32 %v477_v38, %v477_v38  ;;  %v480_v41 = vmul.f32 %v478_v39, %v478_v39 }
 0x402   :  { %v481_v42 = vadd.f32 %v480_v41, %v479_v40 }
 0x404   :  { %v482_v43 = vrot.slane %v481_v42, 4 }
 0x406   :  { %v483_v44 = vadd.f32 %v482_v43, %v481_v42 }
 0x408   :  { %v484_v45 = vrot.slane %v483_v44, 2 }
 0x40a   :  { %v485_v46 = vadd.f32 %v484_v45, %v483_v44 }
 0x40c   :  { %v486_v47 = vrot.slane %v485_v46, 1 }
 0x40e   :  { %v487_v48 = vadd.f32 %v486_v47, %v485_v46 }
 0x410   :  { %v488_v49 = vmul.f32 0.0625, %v487_v48 }
 0x412   :  { %v489_v50 = vadd.f32 1e-05, %v488_v49 }
 0x414   :  { %1756 = vrsqrt.f32 %v489_v50  ;;  %v725_v50 = vsub.s32 2, %v1933_v51 }
 0x41e   :  { %v1757_v56 = vpop.eup %1756 }
 0x41f   :  { %v491_v57 = vmul.f32 %v1757_v56, %v1941_v53 }
 0x421   :  { %v495_v58 = vrot.slane %v491_v57, %v494_v52  ;;  %v731_v52 = vsub.s32 5, %v1933_v51 }
 0x423   :  { %v496_v60 = vmul.f32 %v495_v58, %v477_v38  ;;  %v497_v61 = vmul.f32 %v495_v58, %v478_v39  ;;  %v732_v58 = vrot.slane %v1944_v54, %v731_v52  ;;  %v1743_v52 = vld [vmem:[#allocation2 + $0x168] sm:$0xff]  }
 0x425   :  { %v502_v62 = vadd.f32 %v501_v59, %v496_v60  ;;  %v503_v63 = vadd.f32 %v501_v59, %v497_v61 }
 0x427   :  { %v1377_v1 = vmul.f32 -1.442695, %v502_v62  ;;  %v1378_v2 = vmul.f32 -1.442695, %v503_v63 }
 0x429   :  { %1758 = vpow2.f32 %v1377_v1 }
 0x42a   :  { %1760 = vpow2.f32 %v1378_v2 }
 0x433   :  { %v1759_v3 = vpop.eup %1758 }
 0x434   :  { %v1761_v4 = vpop.eup %1760  ;;  %v510_v5 = vadd.f32 1.0, %v1759_v3 }
 0x435   :  { %v511_v6 = vadd.f32 1.0, %v1761_v4 }
 0x436   :  { %1762 = vrcp.f32 %v510_v5 }
 0x437   :  { %1764 = vrcp.f32 %v511_v6 }
 0x440   :  { %v1763_v7 = vpop.eup %1762 }
 0x441   :  { %v1765_v8 = vpop.eup %1764  ;;  %v516_v9 = vmul.f32 %v1763_v7, %v502_v62 }
 0x442   :  { %v517_v10 = vmul.f32 %v1765_v8, %v503_v63 }
 0x444   :  { %v535_v11 = vpack.c.bf16 %v517_v10, %v516_v9 }
 0x446   :  { %1575 = vmatmul.mubr.bf16.vlgmr.msra.gmra.mrb[8].mxu1 %v535_v11 }
 0x447   :  { %1609 = vmatprep.mubr.msk.f32.mxu1 %vm156_vm1, %v1909_v12 }
 0x519   :  { %v618_v13 = vpop.f32.mrb[8].mxu1 }
 0x51a   :  { %v1576_v14 = vpop.f32.mrb[9].mxu1 }
 0x51b   :  { %v621_v15 = vpop.f32.mrb[10].mxu1 }
 0x51c   :  { %v1674_v16 = vpack.c.bf16 %v621_v15, %v618_v13  ;;  %v1577_v17 = vpop.f32.mrb[11].mxu1 }
 0x51d   :  { %v1731_v17 = vld [vmem:[#allocation2 + $0x108] sm:$0xff]  }
 0x51e   :  { %1675 = vmatprep.subr.bf16.mxu0 %v1674_v16 }
 0x51f   :  { %1677 = vmatpush3.bf16.msra.mxu0 %v1674_v16  ;;  %v1730_v16 = vld [vmem:[#allocation2 + $0x100] sm:$0xff]  }
 0x520   :  { %1585 = vmatprep.subr.bf16.mxu0 %v1843_v0 }
 0x522   :  { %1583 = vmatmul.mubr.msk.f32.vlgmr.msra.gmra.mrb[6].mxu0 %vm156_vm1, %v1918_v18 }
 0x523   :  { %1601 = vmatprep.mubr.msk.bf16.mxu0 %vm1844_vm0, %v1843_v0  ;;  %1586 = vmatpush3.bf16.msra.mxu0 %v1722_v19  ;;  %v1732_v19 = vld [vmem:[#allocation2 + $0x110] sm:$0xff]  }
 0x524   :  { %1587 = vmatprep.subr.bf16.mxu0 %v1843_v0 }
 0x527   :  { %1588 = vmatpush3.bf16.msra.mxu0 %v1723_v20  ;;  %v1733_v20 = vld [vmem:[#allocation2 + $0x118] sm:$0xff]  }
 0x528   :  { %1589 = vmatprep.subr.bf16.mxu0 %v1843_v0 }
 0x52b   :  { %1590 = vmatpush3.bf16.msra.mxu0 %v1724_v21  ;;  %v1734_v21 = vld [vmem:[#allocation2 + $0x120] sm:$0xff]  }
 0x52c   :  { %1591 = vmatprep.subr.bf16.mxu0 %v1843_v0 }
 0x52f   :  { %1592 = vmatpush3.bf16.msra.mxu0 %v1725_v22  ;;  %v1735_v22 = vld [vmem:[#allocation2 + $0x128] sm:$0xff]  }
 0x530   :  { %1593 = vmatprep.subr.bf16.mxu0 %v1843_v0 }
 0x533   :  { %1594 = vmatpush3.bf16.msra.mxu0 %v1726_v23  ;;  %v1736_v23 = vld [vmem:[#allocation2 + $0x130] sm:$0xff]  }
 0x534   :  { %1595 = vmatprep.subr.bf16.mxu0 %v1843_v0 }
 0x537   :  { %1596 = vmatpush3.bf16.msra.mxu0 %v1727_v24  ;;  %v1737_v24 = vld [vmem:[#allocation2 + $0x138] sm:$0xff]  }
 0x538   :  { %1597 = vmatprep.subr.bf16.mxu0 %v1843_v0 }
 0x53b   :  { %1598 = vmatpush3.bf16.msra.mxu0 %v1728_v25  ;;  %v858_v25 = vsub.s32 6, %v1933_v51 }
 0x53c   :  { %1599 = vmatprep.subr.bf16.mxu0 %v1843_v0 }
 0x53f   :  { %1600 = vmatpush3.bf16.msra.mxu0 %v1729_v26  ;;  %v859_v26 = vrot.slane %v1941_v53, %v858_v25 }
 0x540   :  { %1612 = vmatprep.subr.bf16.mxu0 %v1843_v0 }
 0x5f5   :  { %v1584_v27 = vpop.f32.mrb[6].mxu0 }
 0x5f6   :  { %v691_v28 = vpop.f32.mrb[7].mxu0 }
 0x5f7   :  { %v700_v29 = vadd.f32 %v1584_v27, %v691_v28 }
 0x5f9   :  { %v701_v30 = vrot.slane %v700_v29, 4 }
 0x5fb   :  { %v702_v31 = vadd.f32 %v701_v30, %v700_v29 }
 0x5fd   :  { %v703_v32 = vrot.slane %v702_v31, 2 }
 0x5ff   :  { %v704_v33 = vadd.f32 %v703_v32, %v702_v31 }
 0x601   :  { %v705_v34 = vrot.slane %v704_v33, 1 }
 0x603   :  { %v706_v35 = vadd.f32 %v705_v34, %v704_v33 }
 0x605   :  { %v707_v36 = vmul.f32 0.0625, %v706_v35 }
 0x607   :  { %v708_v37 = vsub.f32 %v691_v28, %v707_v36  ;;  %v709_v38 = vsub.f32 %v1584_v27, %v707_v36 }
 0x609   :  { %v710_v39 = vmul.f32 %v708_v37, %v708_v37  ;;  %v711_v40 = vmul.f32 %v709_v38, %v709_v38 }
 0x60b   :  { %v712_v41 = vadd.f32 %v711_v40, %v710_v39 }
 0x60d   :  { %v713_v42 = vrot.slane %v712_v41, 4 }
 0x60f   :  { %v714_v43 = vadd.f32 %v713_v42, %v712_v41 }
 0x611   :  { %v715_v44 = vrot.slane %v714_v43, 2 }
 0x613   :  { %v716_v45 = vadd.f32 %v715_v44, %v714_v43 }
 0x615   :  { %v717_v46 = vrot.slane %v716_v45, 1 }
 0x617   :  { %v718_v47 = vadd.f32 %v717_v46, %v716_v45 }
 0x619   :  { %v719_v48 = vmul.f32 0.0625, %v718_v47  ;;  %v1738_v47 = vld [vmem:[#allocation2 + $0x140] sm:$0xff]  }
 0x61b   :  { %v720_v49 = vadd.f32 1e-05, %v719_v48  ;;  %v1740_v48 = vld [vmem:[#allocation2 + $0x150] sm:$0xff]  }
 0x61d   :  { %1766 = vrsqrt.f32 %v720_v49  ;;  %v1741_v49 = vld [vmem:[#allocation2 + $0x158] sm:$0xff]  }
 0x627   :  { %v1767_v55 = vpop.eup %1766 }
 0x628   :  { %v722_v56 = vmul.f32 %v1767_v55, %v1941_v53  ;;  %v1744_v55 = vld [vmem:[#allocation2 + $0x170] sm:$0xff]  }
 0x62a   :  { %v726_v57 = vrot.slane %v722_v56, %v725_v50  ;;  %v1742_v50 = vld [vmem:[#allocation2 + $0x160] sm:$0xff]   ;;  %v1745_v56 = vld [vmem:[#allocation2 + $0x178] sm:$0xff]  }
 0x62c   :  { %v727_v59 = vmul.f32 %v726_v57, %v708_v37  ;;  %v728_v60 = vmul.f32 %v726_v57, %v709_v38  ;;  %v1058_v57 = vsub.s32 7, %v1933_v51 }
 0x62e   :  { %v733_v61 = vadd.f32 %v732_v58, %v727_v59  ;;  %v734_v62 = vadd.f32 %v732_v58, %v728_v60  ;;  %v1059_v58 = vrot.slane %v1941_v53, %v1058_v57 }
 0x630   :  { %v1389_v63 = vmul.f32 -1.442695, %v733_v61  ;;  %v1390_v1 = vmul.f32 -1.442695, %v734_v62 }
 0x632   :  { %1768 = vpow2.f32 %v1389_v63 }
 0x633   :  { %1770 = vpow2.f32 %v1390_v1 }
 0x63c   :  { %v1769_v2 = vpop.eup %1768 }
 0x63d   :  { %v1771_v3 = vpop.eup %1770  ;;  %v741_v4 = vadd.f32 1.0, %v1769_v2 }
 0x63e   :  { %v742_v5 = vadd.f32 1.0, %v1771_v3 }
 0x63f   :  { %1772 = vrcp.f32 %v741_v4 }
 0x640   :  { %1774 = vrcp.f32 %v742_v5 }
 0x649   :  { %v1773_v6 = vpop.eup %1772 }
 0x64a   :  { %v1775_v7 = vpop.eup %1774  ;;  %v747_v8 = vmul.f32 %v1773_v6, %v733_v61 }
 0x64b   :  { %v748_v9 = vmul.f32 %v1775_v7, %v734_v62 }
 0x64d   :  { %v766_v10 = vpack.c.bf16 %v748_v9, %v747_v8 }
 0x64f   :  { %1602 = vmatmul.mubr.bf16.vlgmr.msra.gmra.mrb[8].mxu0 %v766_v10 }
 0x650   :  { %1628 = vmatprep.mubr.msk.bf16.mxu0 %vm1844_vm0, %v1843_v0  ;;  %1613 = vmatpush3.bf16.msra.mxu0 %v1730_v16 }
 0x651   :  { %1614 = vmatprep.subr.bf16.mxu0 %v1843_v0 }
 0x654   :  { %1615 = vmatpush3.bf16.msra.mxu0 %v1731_v17 }
 0x655   :  { %1616 = vmatprep.subr.bf16.mxu0 %v1843_v0 }
 0x658   :  { %1617 = vmatpush3.bf16.msra.mxu0 %v1732_v19 }
 0x659   :  { %1618 = vmatprep.subr.bf16.mxu0 %v1843_v0 }
 0x65c   :  { %1619 = vmatpush3.bf16.msra.mxu0 %v1733_v20 }
 0x65d   :  { %1620 = vmatprep.subr.bf16.mxu0 %v1843_v0 }
 0x660   :  { %1621 = vmatpush3.bf16.msra.mxu0 %v1734_v21 }
 0x661   :  { %1622 = vmatprep.subr.bf16.mxu0 %v1843_v0 }
 0x664   :  { %1623 = vmatpush3.bf16.msra.mxu0 %v1735_v22 }
 0x665   :  { %1624 = vmatprep.subr.bf16.mxu0 %v1843_v0 }
 0x668   :  { %1625 = vmatpush3.bf16.msra.mxu0 %v1736_v23 }
 0x669   :  { %1626 = vmatprep.subr.bf16.mxu0 %v1843_v0 }
 0x66c   :  { %1627 = vmatpush3.bf16.msra.mxu0 %v1737_v24 }
 0x722   :  { %v849_v54 = vpop.f32.mrb[8].mxu0 }
 0x723   :  { %v1603_v11 = vpop.f32.mrb[9].mxu0 }
 0x724   :  { %v852_v13 = vpop.f32.mrb[10].mxu0 }
 0x725   :  { %v1678_v14 = vpack.c.bf16 %v852_v13, %v849_v54  ;;  %v1604_v15 = vpop.f32.mrb[11].mxu0  ;;  %v1423_v13 = vld [vmem:[%s2037_s3 + $0x8] ss:$0 sm:$0xff] }
 0x727   :  { %1679 = vmatprep.subr.bf16.mxu1 %v1678_v14 }
 0x728   :  { %1681 = vmatpush3.bf16.msra.mxu1 %v1678_v14 }
 0x72b   :  { %1610 = vmatmul.mubr.msk.f32.vlgmr.msra.gmra.mrb[2].mxu1 %vm156_vm1, %v1918_v18 }
 0x72c   :  { %1636 = vmatprep.mubr.msk.f32.mxu1 %vm156_vm1, %v1909_v12 }
 0x7fe   :  { %v1611_v27 = vpop.f32.mrb[2].mxu1 }
 0x7ff   :  { %v932_v28 = vadd.f32 %v1611_v27, %v859_v26  ;;  %v926_v29 = vpop.f32.mrb[3].mxu1 }
 0x800   :  { %v927_v30 = vadd.f32 %v926_v29, %v859_v26 }
 0x801   :  { %v1402_v31 = vmul.f32 -1.442695, %v932_v28 }
 0x802   :  { %v1401_v32 = vmul.f32 -1.442695, %v927_v30 }
 0x803   :  { %1776 = vpow2.f32 %v1402_v31 }
 0x804   :  { %1778 = vpow2.f32 %v1401_v32 }
 0x80d   :  { %v1777_v33 = vpop.eup %1776 }
 0x80e   :  { %v1779_v34 = vpop.eup %1778  ;;  %v942_v35 = vadd.f32 1.0, %v1777_v33 }
 0x80f   :  { %v941_v36 = vadd.f32 1.0, %v1779_v34 }
 0x810   :  { %1780 = vrcp.f32 %v942_v35 }
 0x811   :  { %1782 = vrcp.f32 %v941_v36 }
 0x81a   :  { %v1781_v37 = vpop.eup %1780 }
 0x81b   :  { %v1783_v38 = vpop.eup %1782  ;;  %v948_v39 = vmul.f32 %v1781_v37, %v932_v28 }
 0x81c   :  { %v947_v40 = vmul.f32 %v1783_v38, %v927_v30 }
 0x81e   :  { %v966_v41 = vpack.c.bf16 %v948_v39, %v947_v40 }
 0x820   :  { %1629 = vmatmul.mubr.bf16.vlgmr.msra.gmra.mrb[12].mxu0 %v966_v41 }
 0x821   :  { %1663 = vmatprep.mubr.msk.f32.mxu0 %vm156_vm1, %v1909_v12  ;;  %v1739_v12 = vld [vmem:[#allocation2 + $0x148] sm:$0xff]  }
 0x8f3   :  { %v1049_v42 = vpop.f32.mrb[12].mxu0 }
 0x8f4   :  { %v1630_v43 = vpop.f32.mrb[13].mxu0 }
 0x8f5   :  { %v1052_v44 = vpop.f32.mrb[14].mxu0 }
 0x8f6   :  { %v1682_v45 = vpack.c.bf16 %v1052_v44, %v1049_v42  ;;  %v1631_v46 = vpop.f32.mrb[15].mxu0 }
 0x8f8   :  { %1683 = vmatprep.subr.bf16.mxu1 %v1682_v45 }
 0x8f9   :  { %1685 = vmatpush3.bf16.msra.mxu1 %v1682_v45 }
 0x8fa   :  { %1639 = vmatprep.subr.bf16.mxu1 %v1843_v0 }
 0x8fc   :  { %1637 = vmatmul.mubr.msk.f32.vlgmr.msra.gmra.mrb[12].mxu1 %vm156_vm1, %v1918_v18 }
 0x8fd   :  { %1655 = vmatprep.mubr.msk.bf16.mxu1 %vm1844_vm0, %v1843_v0  ;;  %1640 = vmatpush3.bf16.msra.mxu1 %v1738_v47 }
 0x8fe   :  { %1641 = vmatprep.subr.bf16.mxu1 %v1843_v0 }
 0x901   :  { %1642 = vmatpush3.bf16.msra.mxu1 %v1739_v12 }
 0x902   :  { %1643 = vmatprep.subr.bf16.mxu1 %v1843_v0 }
 0x905   :  { %1644 = vmatpush3.bf16.msra.mxu1 %v1740_v48 }
 0x906   :  { %1645 = vmatprep.subr.bf16.mxu1 %v1843_v0 }
 0x909   :  { %1646 = vmatpush3.bf16.msra.mxu1 %v1741_v49 }
 0x90a   :  { %1647 = vmatprep.subr.bf16.mxu1 %v1843_v0 }
 0x90d   :  { %1648 = vmatpush3.bf16.msra.mxu1 %v1742_v50 }
 0x90e   :  { %1649 = vmatprep.subr.bf16.mxu1 %v1843_v0 }
 0x911   :  { %1650 = vmatpush3.bf16.msra.mxu1 %v1743_v52 }
 0x912   :  { %1651 = vmatprep.subr.bf16.mxu1 %v1843_v0 }
 0x915   :  { %1652 = vmatpush3.bf16.msra.mxu1 %v1744_v55 }
 0x916   :  { %1653 = vmatprep.subr.bf16.mxu1 %v1843_v0 }
 0x919   :  { %1654 = vmatpush3.bf16.msra.mxu1 %v1745_v56 }
 0x9cf   :  { %v1638_v59 = vpop.f32.mrb[12].mxu1 }
 0x9d0   :  { %v1132_v60 = vadd.f32 %v1638_v59, %v1059_v58  ;;  %v1126_v61 = vpop.f32.mrb[13].mxu1 }
 0x9d1   :  { %v1127_v62 = vadd.f32 %v1126_v61, %v1059_v58 }
 0x9d2   :  { %v1414_v63 = vmul.f32 -1.442695, %v1132_v60 }
 0x9d3   :  { %v1413_v1 = vmul.f32 -1.442695, %v1127_v62 }
 0x9d4   :  { %1784 = vpow2.f32 %v1414_v63 }
 0x9d5   :  { %1786 = vpow2.f32 %v1413_v1 }
 0x9de   :  { %v1785_v2 = vpop.eup %1784 }
 0x9df   :  { %v1787_v3 = vpop.eup %1786  ;;  %v1142_v4 = vadd.f32 1.0, %v1785_v2 }
 0x9e0   :  { %v1141_v5 = vadd.f32 1.0, %v1787_v3 }
 0x9e1   :  { %1788 = vrcp.f32 %v1142_v4 }
 0x9e2   :  { %1790 = vrcp.f32 %v1141_v5 }
 0x9eb   :  { %v1789_v0 = vpop.eup %1788 }
 0x9ec   :  { %v1791_v6 = vpop.eup %1790  ;;  %v1148_v7 = vmul.f32 %v1789_v0, %v1132_v60 }
 0x9ed   :  { %v1147_v51 = vmul.f32 %v1791_v6, %v1127_v62 }
 0x9ef   :  { %v1166_v8 = vpack.c.bf16 %v1148_v7, %v1147_v51 }
 0x9f1   :  { %1656 = vmatmul.mubr.bf16.vlgmr.msra.gmra.mrb[16].mxu1 %v1166_v8 }
 0xac4   :  { %v1249_v53 = vpop.f32.mrb[16].mxu1 }
 0xac5   :  { %v1657_v9 = vpop.f32.mrb[17].mxu1 }
 0xac6   :  { %v1252_v10 = vpop.f32.mrb[18].mxu1 }
 0xac7   :  { %v1686_v54 = vpack.c.bf16 %v1252_v10, %v1249_v53  ;;  %v1658_v11 = vpop.f32.mrb[19].mxu1 }
 0xac9   :  { %1687 = vmatprep.subr.bf16.mxu0 %v1686_v54 }
 0xaca   :  { %1689 = vmatpush3.bf16.msra.mxu0 %v1686_v54 }
 0xacd   :  { %1664 = vmatmul.mubr.msk.f32.vlgmr.msra.gmra.mrb[16].mxu0 %vm156_vm1, %v1918_v18 }
 0xba0   :  { %v1665_v14 = vpop.f32.mrb[16].mxu0 }
 0xba1   :  { %v1332_v15 = vadd.f32 %v1665_v14, %v1423_v13  ;;  %v1326_v16 = vpop.f32.mrb[17].mxu0 }
 0xba2   :  { %v1327_v17 = vadd.f32 %v1423_v13, %v1326_v16 }
 0xba3   :  { %1336 = vst [vmem:[#allocation5 + $0x8] sm:$0xff] %v1332_v15 }
 0xba4   :  { %1335 = vst [vmem:[#allocation5] sm:$0xff] %v1327_v17 }
 0xba5   :  { %1825 = shalt.err (!%p1822_p12)
}
 0xba6   :  { %s1826_s3 = scalar_lea.hbm %s2039_s5, 256 }
 0xba7   :  { %p1827_p13 = scmp.ne.s32.totalorder %s2039_s5, %s1826_s3  ;;  %p1830_p0 = scmp.lt.u32.totalorder %s1826_s3, %s2039_s5 }
 0xba9   :  { %p1832_p1 = pnand %p1830_p0, %p1827_p13 }
 0xbab   :  { %1835 = shalt.err (!%p1832_p1)
}
 0xbac   :  { %s1846_s26 = smov 128   ;;  %s1847_s27 = smov 8  }
 0xbad   :  { %1348 = dma.vmem_to_hbm [thread:$0]  %s1343_s18, 256, %s2039_s5, [#allocation4], %s1846_s26, %s1846_s26, %s1847_s27  }
 0xbae   :  { %1838 = dma.done.wait [#allocation4], 256  }
 0xbaf   :  { %1839 = vsyncadd [#allocation4], 4294967040 }
 0xbb0   :  { %1352 = vsyncpa [#allocation3], 1 }
 0xbb1   :  { %1353 = vsyncpa [#allocation4], 1 }

</bundles_post_ra>
